<compile_context>
chip_gen: v6e
topology: v6e:2x2x1
jax: 0.10.0
libtpu: 0.0.40
codegen_flags: <defaults>
</compile_context>

<pallas_src>
import jax
import jax.numpy as jnp
from jax.experimental import pallas as pl
from jax.experimental.pallas import tpu as pltpu


def _round_up(x, m):
    return -(-x // m) * m


def _padded_logits_bytes_per_pixel(c, dtype):
    """Padded VMEM bytes per pixel of a (C, tile_p) block (sublane padding)."""
    itemsize = jnp.dtype(dtype).itemsize
    pack = max(1, 4 // itemsize)          # values packed per 32-bit sublane row
    padded_c = _round_up(c, 8 * pack)     # sublanes pad to 8 x 32-bit rows
    return padded_c * itemsize


def _choose_tile_p(hw, c, num_splits, logits_dtype, target_buffer_bytes=4 << 20):
    """Pixels per grid step: ~target_bytes of *padded* logits per pipeline buffer."""
    bpp = _padded_logits_bytes_per_pixel(c, logits_dtype)
    tile = max(128, (target_buffer_bytes // bpp) // 128 * 128)
    per_split = max(128, _round_up(-(-hw // num_splits), 128))
    return min(tile, per_split)


def _choose_lane_width(tile_p, c):
    """Largest lane chunk dividing tile_p, capped for vreg pressure at large C."""
    cap = 128 if c >= 32 else (256 if c >= 16 else 512)
    for lw in (512, 256, 128):
        if lw <= cap and tile_p % lw == 0:
            return lw
    return 128


def dice_loss(y_pred, y_true, weights=None, eps=1.0):
    """Dice loss matching the PyTorch DiceLoss.forward semantics.

    y_pred : (N, C, H, W) float logits (f32 or bf16)
    y_true : (N, H, W)    integer class ids (any integer dtype)
    weights: optional (C,) class weights (defaults to ones)
    """
    n, c, h, w = y_pred.shape
    hw = h * w

    # NCHW -> (N, C, H*W) / (N, 1, H*W): contiguous reshapes, no HBM transpose.
    logits = y_pred.reshape(n, c, hw)
    if not jnp.issubdtype(y_true.dtype, jnp.integer):
        y_true = y_true.astype(jnp.int32)
    labels = y_true.reshape(n, 1, hw)

    # Small-batch dual-core split (v7x): extra "parallel" axis over pixel halves
    # with private accumulators; a structural no-op on single-TC chips.
    num_splits = 2 if (n == 1 and hw > 128) else 1

    tile_p = _choose_tile_p(hw, c, num_splits, logits.dtype)
    lw = _choose_lane_width(tile_p, c)
    nk = tile_p // lw
    blocks_total = pl.cdiv(hw, tile_p)
    n_j = pl.cdiv(blocks_total, num_splits)
    needs_mask = (blocks_total * tile_p != hw) or (num_splits * n_j != blocks_total)
    unroll = 2 if c >= 16 else 4

    if num_splits * n_j == blocks_total:
        def pix_block_idx(s, j):
            return s * n_j + j
    else:
        # Some trailing blocks of the last split are past the end; clamp the DMA
        # (the kernel masks them to zero contribution via the unclamped index).
        def pix_block_idx(s, j):
            return jnp.minimum(s * n_j + j, blocks_total - 1)

    def kernel(logits_ref, labels_ref, inter_ref, psum_ref, cnt_ref):
        # logits_ref: (C, tile_p) raw logits (channels on sublanes, pixels on lanes)
        # labels_ref: (1, tile_p) integer class ids
        # *_ref out : (C, LW) f32 accumulators, resident across the j axis.
        @pl.when(pl.program_id(2) == 0)
        def _():
            inter_ref[...] = jnp.zeros_like(inter_ref)
            psum_ref[...] = jnp.zeros_like(psum_ref)
            cnt_ref[...] = jnp.zeros_like(cnt_ref)

        # One-vreg channel-id column; broadcasts along lanes at the compare.
        ch_iota = jax.lax.broadcasted_iota(jnp.int32, (c, 1), 0)

        if needs_mask:
            pix_block = pl.program_id(1) * n_j + pl.program_id(2)
            block_base = pix_block * tile_p
            lane_iota = jax.lax.broadcasted_iota(jnp.int32, (1, lw), 1)

        def process_chunk(off, carry):
            inter_a, psum_a, cnt_a = carry
            x = logits_ref[:, pl.ds(off, lw)].astype(jnp.float32)     # (C, LW)
            lbl = labels_ref[:, pl.ds(off, lw)].astype(jnp.int32)     # (1, LW)

            if needs_mask:
                valid = (block_base + off + lane_iota) < hw           # (1, LW)
                x = jnp.where(valid, x, 0.0)        # keep padded lanes finite

            # Numerically stable softmax over the channel (sublane) axis.
            m = jnp.max(x, axis=0, keepdims=True)                     # (1, LW) XLU
            e = jnp.exp(x - m)                                        # (C, LW) EUP
            s = jnp.sum(e, axis=0, keepdims=True)                     # (1, LW) XLU
            r = pl.reciprocal(s, approx=True)                         # EUP slot
            r = r * (2.0 - s * r)               # one Newton step -> ~1e-7 rel err
            p = e * r                                                 # (C, LW)

            hit = ch_iota == lbl                                      # (C, LW) one-hot
            if needs_mask:
                hit = jnp.logical_and(hit, valid)
                p_valid = jnp.where(valid, p, 0.0)
            else:
                p_valid = p

            inter_a = inter_a + jnp.where(hit, p, 0.0)
            psum_a = psum_a + p_valid
            cnt_a = cnt_a + jnp.where(hit, 1.0, 0.0)
            return inter_a, psum_a, cnt_a

        zeros = jnp.zeros((c, lw), jnp.float32)
        carry = (zeros, zeros, zeros)
        # TODO(synk): for C <= 4, pack 8//C pixel sub-chunks into the 8 sublanes
        # (segmented sublane reduce via pltpu.roll) to fill vregs on v6e/v7x.
        if nk <= 8:
            # Short static trip count: fully unroll at trace time.
            for k in range(nk):
                carry = process_chunk(k * lw, carry)
        else:
            def body(k, carry):
                off = pl.multiple_of(k * lw, lw)
                return process_chunk(off, carry)
            carry = jax.lax.fori_loop(0, nk, body, carry, unroll=unroll)

        inter_a, psum_a, cnt_a = carry
        inter_ref[...] += inter_a
        psum_ref[...] += psum_a
        cnt_ref[...] += cnt_a

    acc_shape = jax.ShapeDtypeStruct((n, num_splits, c, lw), jnp.float32)
    acc_spec = pl.BlockSpec((None, None, c, lw), lambda i, s, j: (i, s, 0, 0))

    inter, psum, cnt = pl.pallas_call(
        kernel,
        out_shape=(acc_shape, acc_shape, acc_shape),
        grid_spec=pltpu.PrefetchScalarGridSpec(
            num_scalar_prefetch=0,
            grid=(n, num_splits, n_j),
            in_specs=[
                pl.BlockSpec((None, c, tile_p),
                             lambda i, s, j: (i, 0, pix_block_idx(s, j))),
                pl.BlockSpec((None, 1, tile_p),
                             lambda i, s, j: (i, 0, pix_block_idx(s, j))),
            ],
            out_specs=(acc_spec, acc_spec, acc_spec),
        ),
        compiler_params=pltpu.CompilerParams(
            # batch + core-split axes parallel (v7x dual-TC); the pixel-block
            # axis is the reduction the accumulators stay resident over.
            dimension_semantics=("parallel", "parallel", "arbitrary"),
            # 2 buffers x (padded logits + padded labels) <= ~17 MiB with the
            # 4 MiB target, so 32 MiB is safe on v5e/v6e (128 MiB) and v7x (64 MiB).
            vmem_limit_bytes=32 * 1024 * 1024,
        ),
    )(logits, labels)

    # Tiny per-channel tail in plain JAX (length-C vectors).
    inter_c = jnp.sum(inter, axis=(0, 1, 3))                          # (C,)
    union_c = jnp.sum(psum, axis=(0, 1, 3)) + jnp.sum(cnt, axis=(0, 1, 3))

    if weights is None:
        weights = jnp.ones((c,), dtype=jnp.float32)
    else:
        weights = jnp.asarray(weights, dtype=jnp.float32)

    dice_per_channel = weights * (1.0 - 2.0 * inter_c / (union_c + eps))
    return jnp.mean(dice_per_channel)


def _reference_dice_loss(y_pred, y_true, weights=None, eps=1.0):
    """Pure-JAX reference replicating the PyTorch module exactly."""
    c = y_pred.shape[1]
    onehot = jax.nn.one_hot(y_true.astype(jnp.int32), c, dtype=jnp.float32)
    onehot = jnp.transpose(onehot, (0, 3, 1, 2))                      # (N, C, H, W)
    p = jax.nn.softmax(y_pred.astype(jnp.float32), axis=1)
    if weights is None:
        weights = jnp.ones((c,), dtype=jnp.float32)
    else:
        weights = jnp.asarray(weights, dtype=jnp.float32)
    inter = (p * onehot).sum(axis=0).sum(axis=1).sum(axis=1)
    union = (p + onehot).sum(axis=0).sum(axis=1).sum(axis=1)
    dpc = weights * (1.0 - 2.0 * inter / (union + eps))
    return dpc.mean()


if __name__ == "__main__":
    key = jax.random.PRNGKey(0)
    k1, k2, k3, k4, k5 = jax.random.split(key, 5)

    # Main check: small shapes, even H*W, batch-parallel path.
    N, C, H, W = 2, 4, 16, 16
    y_pred = jax.random.normal(k1, (N, C, H, W), dtype=jnp.float32)
    y_true = jax.random.randint(k2, (N, H, W), 0, C, dtype=jnp.int32)
    loss = jax.block_until_ready(dice_loss(y_pred, y_true, eps=1.0))
    ref = jax.block_until_ready(_reference_dice_loss(y_pred, y_true, eps=1.0))
    assert jnp.allclose(loss, ref, atol=1e-5, rtol=1e-5), (loss, ref)

    # Ragged H*W with N == 1: exercises the masked tail, the dual-core pixel
    # split, the fori_loop chunk path, and class weights.
    N2, C2, H2, W2 = 1, 3, 48, 47
    y_pred2 = jax.random.normal(k3, (N2, C2, H2, W2), dtype=jnp.float32)
    y_true2 = jax.random.randint(k4, (N2, H2, W2), 0, C2, dtype=jnp.int32)
    wts = jax.random.uniform(k5, (C2,), dtype=jnp.float32) + 0.5
    loss2 = jax.block_until_ready(dice_loss(y_pred2, y_true2, weights=wts, eps=1.0))
    ref2 = jax.block_until_ready(_reference_dice_loss(y_pred2, y_true2, weights=wts, eps=1.0))
    assert jnp.allclose(loss2, ref2, atol=1e-5, rtol=1e-5), (loss2, ref2)

    print("KERNEL_OK")
</pallas_src>

<mosaic_0001>
module attributes {stable_mosaic.version = 11 : i64} {
  func.func @kernel(%arg0: i32, %arg1: i32, %arg2: i32, %arg3: memref<1x4x256xf32, #tpu.memory_space<vmem>>, %arg4: memref<1x1x256xi32, #tpu.memory_space<vmem>>, %arg5: memref<1x1x4x256xf32, #tpu.memory_space<vmem>>, %arg6: memref<1x1x4x256xf32, #tpu.memory_space<vmem>>, %arg7: memref<1x1x4x256xf32, #tpu.memory_space<vmem>>) attributes {dimension_semantics = [#tpu.dimension_semantics<parallel>, #tpu.dimension_semantics<parallel>, #tpu.dimension_semantics<arbitrary>], iteration_bounds = array<i64: 2, 1, 1>, scalar_prefetch = 0 : i64, scratch_operands = 0 : i64, tpu.core_type = #tpu.core_type<tc>, window_params = [{transform_indices = @transform_0, window_bounds = array<i64: 1, 4, 256>}, {transform_indices = @transform_1, window_bounds = array<i64: 1, 1, 256>}, {transform_indices = @transform_2, window_bounds = array<i64: 1, 1, 4, 256>}, {transform_indices = @transform_3, window_bounds = array<i64: 1, 1, 4, 256>}, {transform_indices = @transform_4, window_bounds = array<i64: 1, 1, 4, 256>}]} {
    %c0_i32 = arith.constant 0 : i32
    %0 = arith.cmpi eq, %arg2, %c0_i32 : i32
    %1 = arith.extui %0 : i1 to i32
    %c0_i32_0 = arith.constant 0 : i32
    %2 = arith.cmpi ne, %1, %c0_i32_0 : i32
    scf.if %2 {
      %cst_36 = arith.constant 0.000000e+00 : f32
      %52 = vector.broadcast %cst_36 : f32 to vector<4x256xf32>
      %c0_37 = arith.constant 0 : index
      %c0_38 = arith.constant 0 : index
      %c0_39 = arith.constant 0 : index
      %c0_40 = arith.constant 0 : index
      %53 = vector.load %arg5[%c0_37, %c0_38, %c0_39, %c0_40] : memref<1x1x4x256xf32, #tpu.memory_space<vmem>>, vector<1x1x4x256xf32>
      %54 = vector.shape_cast %53 : vector<1x1x4x256xf32> to vector<4x256xf32>
      %55 = vector.shape_cast %52 : vector<4x256xf32> to vector<1x1x4x256xf32>
      tpu.vector_store %arg5[%c0_37, %c0_38, %c0_39, %c0_40], %55 {strides = array<i32>} : memref<1x1x4x256xf32, #tpu.memory_space<vmem>>, vector<1x1x4x256xf32>,
      %cst_41 = arith.constant 0.000000e+00 : f32
      %56 = vector.broadcast %cst_41 : f32 to vector<4x256xf32>
      %c0_42 = arith.constant 0 : index
      %c0_43 = arith.constant 0 : index
      %c0_44 = arith.constant 0 : index
      %c0_45 = arith.constant 0 : index
      %57 = vector.load %arg6[%c0_42, %c0_43, %c0_44, %c0_45] : memref<1x1x4x256xf32, #tpu.memory_space<vmem>>, vector<1x1x4x256xf32>
      %58 = vector.shape_cast %57 : vector<1x1x4x256xf32> to vector<4x256xf32>
      %59 = vector.shape_cast %56 : vector<4x256xf32> to vector<1x1x4x256xf32>
      tpu.vector_store %arg6[%c0_42, %c0_43, %c0_44, %c0_45], %59 {strides = array<i32>} : memref<1x1x4x256xf32, #tpu.memory_space<vmem>>, vector<1x1x4x256xf32>,
      %cst_46 = arith.constant 0.000000e+00 : f32
      %60 = vector.broadcast %cst_46 : f32 to vector<4x256xf32>
      %c0_47 = arith.constant 0 : index
      %c0_48 = arith.constant 0 : index
      %c0_49 = arith.constant 0 : index
      %c0_50 = arith.constant 0 : index
      %61 = vector.load %arg7[%c0_47, %c0_48, %c0_49, %c0_50] : memref<1x1x4x256xf32, #tpu.memory_space<vmem>>, vector<1x1x4x256xf32>
      %62 = vector.shape_cast %61 : vector<1x1x4x256xf32> to vector<4x256xf32>
      %63 = vector.shape_cast %60 : vector<4x256xf32> to vector<1x1x4x256xf32>
      tpu.vector_store %arg7[%c0_47, %c0_48, %c0_49, %c0_50], %63 {strides = array<i32>} : memref<1x1x4x256xf32, #tpu.memory_space<vmem>>, vector<1x1x4x256xf32>,
    } else {
    }
    %3 = tpu.iota {dimensions = array<i32: 0>} : vector<4x1xi32>
    %cst = arith.constant 0.000000e+00 : f32
    %4 = vector.broadcast %cst : f32 to vector<4x256xf32>
    %c0 = arith.constant 0 : index
    %c0_1 = arith.constant 0 : index
    %c0_2 = arith.constant 0 : index
    %5 = vector.load %arg3[%c0, %c0_1, %c0_2] : memref<1x4x256xf32, #tpu.memory_space<vmem>>, vector<1x4x256xf32>
    %6 = vector.shape_cast %5 : vector<1x4x256xf32> to vector<4x256xf32>
    %c0_3 = arith.constant 0 : index
    %c0_4 = arith.constant 0 : index
    %c0_5 = arith.constant 0 : index
    %7 = vector.load %arg4[%c0_3, %c0_4, %c0_5] : memref<1x1x256xi32, #tpu.memory_space<vmem>>, vector<1x1x256xi32>
    %8 = vector.shape_cast %7 : vector<1x1x256xi32> to vector<1x256xi32>
    %cst_6 = arith.constant dense<0xFF800000> : vector<256xf32>
    %9 = vector.multi_reduction <maximumf>, %6, %cst_6 [0] : vector<4x256xf32> to vector<256xf32>
    %10 = vector.shape_cast %9 : vector<256xf32> to vector<1x256xf32>
    %11 = vector.broadcast %10 : vector<1x256xf32> to vector<4x256xf32>
    %12 = arith.subf %6, %11 : vector<4x256xf32>
    %13 = math.exp %12 : vector<4x256xf32>
    %cst_7 = arith.constant dense<0.000000e+00> : vector<256xf32>
    %14 = vector.multi_reduction <add>, %13, %cst_7 [0] : vector<4x256xf32> to vector<256xf32>
    %15 = vector.shape_cast %14 : vector<256xf32> to vector<1x256xf32>
    %16 = tpu.reciprocal %15 {approx = true} : vector<1x256xf32> -> vector<1x256xf32>
    %17 = arith.mulf %15, %16 : vector<1x256xf32>
    %cst_8 = arith.constant 2.000000e+00 : f32
    %18 = vector.broadcast %cst_8 : f32 to vector<1x256xf32>
    %19 = arith.subf %18, %17 : vector<1x256xf32>
    %20 = arith.mulf %16, %19 : vector<1x256xf32>
    %21 = vector.broadcast %20 : vector<1x256xf32> to vector<4x256xf32>
    %22 = arith.mulf %13, %21 : vector<4x256xf32>
    %23 = vector.broadcast %3 : vector<4x1xi32> to vector<4x256xi32>
    %24 = vector.broadcast %8 : vector<1x256xi32> to vector<4x256xi32>
    %25 = arith.cmpi eq, %23, %24 : vector<4x256xi32>
    %cst_9 = arith.constant 0.000000e+00 : f32
    %26 = vector.broadcast %cst_9 : f32 to vector<4x256xf32>
    %27 = arith.select %25, %22, %26 : vector<4x256xi1>, vector<4x256xf32>
    %28 = arith.addf %4, %27 : vector<4x256xf32>
    %29 = arith.addf %4, %22 : vector<4x256xf32>
    %cst_10 = arith.constant 1.000000e+00 : f32
    %cst_11 = arith.constant 0.000000e+00 : f32
    %30 = vector.broadcast %cst_10 : f32 to vector<4x256xf32>
    %31 = vector.broadcast %cst_11 : f32 to vector<4x256xf32>
    %32 = arith.select %25, %30, %31 : vector<4x256xi1>, vector<4x256xf32>
    %33 = arith.addf %4, %32 : vector<4x256xf32>
    %c0_12 = arith.constant 0 : index
    %c0_13 = arith.constant 0 : index
    %c0_14 = arith.constant 0 : index
    %c0_15 = arith.constant 0 : index
    %34 = vector.load %arg5[%c0_12, %c0_13, %c0_14, %c0_15] : memref<1x1x4x256xf32, #tpu.memory_space<vmem>>, vector<1x1x4x256xf32>
    %35 = vector.shape_cast %34 : vector<1x1x4x256xf32> to vector<4x256xf32>
    %36 = arith.addf %35, %28 : vector<4x256xf32>
    %c0_16 = arith.constant 0 : index
    %c0_17 = arith.constant 0 : index
    %c0_18 = arith.constant 0 : index
    %c0_19 = arith.constant 0 : index
    %37 = vector.load %arg5[%c0_16, %c0_17, %c0_18, %c0_19] : memref<1x1x4x256xf32, #tpu.memory_space<vmem>>, vector<1x1x4x256xf32>
    %38 = vector.shape_cast %37 : vector<1x1x4x256xf32> to vector<4x256xf32>
    %39 = vector.shape_cast %36 : vector<4x256xf32> to vector<1x1x4x256xf32>
    tpu.vector_store %arg5[%c0_16, %c0_17, %c0_18, %c0_19], %39 {strides = array<i32>} : memref<1x1x4x256xf32, #tpu.memory_space<vmem>>, vector<1x1x4x256xf32>,
    %c0_20 = arith.constant 0 : index
    %c0_21 = arith.constant 0 : index
    %c0_22 = arith.constant 0 : index
    %c0_23 = arith.constant 0 : index
    %40 = vector.load %arg6[%c0_20, %c0_21, %c0_22, %c0_23] : memref<1x1x4x256xf32, #tpu.memory_space<vmem>>, vector<1x1x4x256xf32>
    %41 = vector.shape_cast %40 : vector<1x1x4x256xf32> to vector<4x256xf32>
    %42 = arith.addf %41, %29 : vector<4x256xf32>
    %c0_24 = arith.constant 0 : index
    %c0_25 = arith.constant 0 : index
    %c0_26 = arith.constant 0 : index
    %c0_27 = arith.constant 0 : index
    %43 = vector.load %arg6[%c0_24, %c0_25, %c0_26, %c0_27] : memref<1x1x4x256xf32, #tpu.memory_space<vmem>>, vector<1x1x4x256xf32>
    %44 = vector.shape_cast %43 : vector<1x1x4x256xf32> to vector<4x256xf32>
    %45 = vector.shape_cast %42 : vector<4x256xf32> to vector<1x1x4x256xf32>
    tpu.vector_store %arg6[%c0_24, %c0_25, %c0_26, %c0_27], %45 {strides = array<i32>} : memref<1x1x4x256xf32, #tpu.memory_space<vmem>>, vector<1x1x4x256xf32>,
    %c0_28 = arith.constant 0 : index
    %c0_29 = arith.constant 0 : index
    %c0_30 = arith.constant 0 : index
    %c0_31 = arith.constant 0 : index
    %46 = vector.load %arg7[%c0_28, %c0_29, %c0_30, %c0_31] : memref<1x1x4x256xf32, #tpu.memory_space<vmem>>, vector<1x1x4x256xf32>
    %47 = vector.shape_cast %46 : vector<1x1x4x256xf32> to vector<4x256xf32>
    %48 = arith.addf %47, %33 : vector<4x256xf32>
    %c0_32 = arith.constant 0 : index
    %c0_33 = arith.constant 0 : index
    %c0_34 = arith.constant 0 : index
    %c0_35 = arith.constant 0 : index
    %49 = vector.load %arg7[%c0_32, %c0_33, %c0_34, %c0_35] : memref<1x1x4x256xf32, #tpu.memory_space<vmem>>, vector<1x1x4x256xf32>
    %50 = vector.shape_cast %49 : vector<1x1x4x256xf32> to vector<4x256xf32>
    %51 = vector.shape_cast %48 : vector<4x256xf32> to vector<1x1x4x256xf32>
    tpu.vector_store %arg7[%c0_32, %c0_33, %c0_34, %c0_35], %51 {strides = array<i32>} : memref<1x1x4x256xf32, #tpu.memory_space<vmem>>, vector<1x1x4x256xf32>,
    return
  }
  func.func @transform_0(%arg0: i32, %arg1: i32, %arg2: i32) -> (i32, i32, i32) {
    %c1_i32 = arith.constant 1 : i32
    %0 = arith.muli %arg1, %c1_i32 : i32
    %1 = arith.addi %0, %arg2 : i32
    %c0_i32 = arith.constant 0 : i32
    %c0_i32_0 = arith.constant 0 : i32
    return %arg0, %c0_i32, %1 : i32, i32, i32
  }
  func.func @transform_1(%arg0: i32, %arg1: i32, %arg2: i32) -> (i32, i32, i32) {
    %c1_i32 = arith.constant 1 : i32
    %0 = arith.muli %arg1, %c1_i32 : i32
    %1 = arith.addi %0, %arg2 : i32
    %c0_i32 = arith.constant 0 : i32
    %c0_i32_0 = arith.constant 0 : i32
    return %arg0, %c0_i32, %1 : i32, i32, i32
  }
  func.func @transform_2(%arg0: i32, %arg1: i32, %arg2: i32) -> (i32, i32, i32, i32) {
    %c0_i32 = arith.constant 0 : i32
    %c0_i32_0 = arith.constant 0 : i32
    %c0_i32_1 = arith.constant 0 : i32
    return %arg0, %arg1, %c0_i32, %c0_i32_0 : i32, i32, i32, i32
  }
  func.func @transform_3(%arg0: i32, %arg1: i32, %arg2: i32) -> (i32, i32, i32, i32) {
    %c0_i32 = arith.constant 0 : i32
    %c0_i32_0 = arith.constant 0 : i32
    %c0_i32_1 = arith.constant 0 : i32
    return %arg0, %arg1, %c0_i32, %c0_i32_0 : i32, i32, i32, i32
  }
  func.func @transform_4(%arg0: i32, %arg1: i32, %arg2: i32) -> (i32, i32, i32, i32) {
    %c0_i32 = arith.constant 0 : i32
    %c0_i32_0 = arith.constant 0 : i32
    %c0_i32_1 = arith.constant 0 : i32
    return %arg0, %arg1, %c0_i32, %c0_i32_0 : i32, i32, i32, i32
  }
}

</mosaic_0001>

<bundles_post_ra>
// kernel: tpu_custom_call.1
= control target key start
LH: loop header
LB: loop body
LE: loop exit
PB: predicated region body
PF: predicated region fallthrough
CT: control target
= control target key end

     0   :  { %s1281_s0 = inlined_call_operand.hbm [shape: f32[2,4,256], index: 0, kind: input, shape index: {}]   ;;  %s1282_s1 = inlined_call_operand.hbm [shape: s32[2,1,256], index: 1, kind: input, shape index: {}]   ;;  %s1283_s2 = inlined_call_operand.hbm [shape: f32[2,1,4,256], index: 2, kind: output, shape index: {0}]   ;;  %s1284_s3 = inlined_call_operand.hbm [shape: f32[2,1,4,256], index: 3, kind: output, shape index: {1}]   ;;  %s1285_s4 = inlined_call_operand.hbm [shape: f32[2,1,4,256], index: 4, kind: output, shape index: {2}]  }
   0x1   :  { %1288 = sst [smem:[#allocation15_spill]] %s1281_s0 }
   0x2   :  { %10 = vsyncpa [#allocation3], 0 }
   0x3   :  { %12 = vsyncpa [#allocation3 + $0x1], 0 }
   0x4   :  { %13 = vsyncpa [#allocation6], 0 }
   0x5   :  { %15 = vsyncpa [#allocation6 + $0x1], 0 }
   0x6   :  { %16 = vsyncpa [#allocation4], 0 }
   0x7   :  { %18 = vsyncpa [#allocation4 + $0x1], 0 }
   0x8   :  { %19 = vsyncpa [#allocation9], 0 }
   0x9   :  { %21 = vsyncpa [#allocation9 + $0x1], 0  ;;  %s1005_s15 = smov 0   ;;  %s1007_s16 = smov 0  }
   0xa   :  { %s1009_s17 = smov 0   ;;  %s1011_s18 = smov 0  }
   0xb   :  { %s1013_s19 = smov 0   ;;  %s1015_s20 = smov 0  }
   0xc LB: > { %s1036_s21 = sadd.s32 4294967295, %s972_s20   ;;  %s1286_s22 = sadd.s32 4294967294, %s972_s20   ;;  %s972_s20 = sphi %s1015_s20, %s27_s20   ;;  %s968_s19 = sphi %s1013_s19, %s1303_s19   ;;  %s964_s18 = sphi %s1011_s18, %s1302_s18   ;;  %s960_s17 = sphi %s1009_s17, %s1301_s17   ;;  %s956_s16 = sphi %s1007_s16, %s1300_s16   ;;  %s952_s15 = sphi %s1005_s15, %s1299_s15  }
   0xd   : > { %s46_s23 = sadd.s32 1, %s968_s19  ;;  %s57_s24 = sadd.s32 1, %s960_s17 }
   0xe   : > { %p48_p0 = scmp.ge.s32.totalorder %s46_s23, 2  ;;  %p64_p1 = scmp.ne.s32.totalorder %s960_s17, %s956_s16 }
   0xf   : > { %p65_p2 = scmp.eq.s32.totalorder %s972_s20, 0  ;;  %p70_p3 = scmp.ne.s32.totalorder %s956_s16, %s952_s15 }
  0x10   : > { %s1305_s23 = smov (%p48_p0, %s46_s23), 0  ;;  %p71_p5 = scmp.eq.s32.totalorder %s1036_s21, 0 }
  0x11   : > { %p1048_p4 = por %p65_p2, %p64_p1  ;;  %s52_s26 = ssub.s32 %s968_s19, %s1305_s23 }
  0x12   : > { %p126_p6 = scmp.eq.s32.totalorder %s1036_s21, 1  ;;  %p55_p7 = scmp.eq.s32.totalorder %s52_s26, 0 }
  0x13   : > { %p1056_p8 = por %p71_p5, %p70_p3  ;;  %p132_p10 = scmp.eq.s32.totalorder %s1286_s22, 1 }
  0x14   : > { %p1060_p9 = por %p126_p6, %p64_p1  ;;  %p718_p13 = scmp.lt.s32.totalorder %s972_s20, 2 }
  0x15   : > { %s1067_s29 = scalar_select %p55_p7, %s960_s17, %s57_s24  }
  0x16   : > { %p1069_p11 = por %p132_p10, %p70_p3  ;;  %s1076_s5 = sand.u32 1, %s960_s17  }
  0x17   : > { %s663_s6 = sshll.u32 %s1076_s5, 3  ;;  %s686_s7 = sshll.u32 %s968_s19, 7 }
  0x18   : > { %s1293_s0 = sld [smem:[#allocation15_spill]]  ;;  %s212_s11 = scalar_lea.vmem [#allocation2], %s663_s6 }
  0x19   : > { %s223_s12 = sshll.u32 %s212_s11, 4  ;;  %p1085_p0 = pnand %p718_p13, %p1048_p4  ;;  %s224_s12 = int_to_ptr.vmem [resolvable:$true] %s223_s12 }
  0x1a   : > { %p669_p1 = scmp.ge.s32.totalorder %s972_s20, 1  ;;  %p250_p2 = scmp.lt.s32.totalorder %s972_s20, 3 }
  0x1b   : > { %s209_s14 = scalar_lea.sflag [#allocation3], %s1076_s5  ;;  %p778_p3 = pneg %p1085_p0 }
  0x1c   : > { %s789_s24 = scalar_lea.vmem %s224_s12, 128  ;;  %s974_s26 = smov [#allocation2]  }
  0x1d   : > { %p790_p5 = scmp.ne.s32.totalorder %s224_s12, %s789_s24  ;;  %s794_s6 = sshll.u32 %s974_s26, 4  ;;  %s795_s6 = int_to_ptr.vmem [resolvable:$false] %s794_s6 }
  0x1e   : > { %s221_s10 = scalar_lea.hbm %s1293_s0, %s686_s7  ;;  %s796_s25 = scalar_lea.vmem %s795_s6, 256 }
  0x1f   : > { %p792_p6 = pnand %p790_p5, %p778_p3  ;;  %p797_p4 = scmp.lt.s32.totalorder %s224_s12, %s795_s6 }
  0x20   : > { %p798_p10 = scmp.lt.s32.totalorder %s796_s25, %s789_s24 }
  0x21   : > { %p793_p7 = pneg %p792_p6 }
  0x22   : > { %p799_p13 = por %p798_p10, %p797_p4 }
  0x24   : > { %p800_p12 = pnand %p799_p13, %p793_p7 }
  0x26   : > { %803 = shalt.err (!%p800_p12)
}
  0x27   : > { %704 = dma.hbm_to_vmem [thread:$0]  (!%p1085_p0), %s221_s10, 128, %s224_s12, %s209_s14  }
  0x28   : > { %p1103_p5 = pnand %p669_p1, %p250_p2  ;;  %s666_s8 = sshll.u32 %s1076_s5, 1 }
  0x29   : > { %s687_s9 = sshll.u32 %s968_s19, 5  ;;  %s234_s6 = scalar_lea.vmem [#allocation5], %s666_s8 }
  0x2a   : > { %s243_s26 = scalar_lea.hbm %s1282_s1, %s687_s9  ;;  %s245_s25 = sshll.u32 %s234_s6, 4  ;;  %s246_s25 = int_to_ptr.vmem [resolvable:$true] %s245_s25 }
  0x2b   : > { %s231_s22 = scalar_lea.sflag [#allocation6], %s1076_s5  ;;  %s817_s0 = scalar_lea.vmem %s246_s25, 32 }
  0x2c   : > { %p818_p12 = scmp.ne.s32.totalorder %s246_s25, %s817_s0  ;;  %s975_s10 = smov [#allocation5]  }
  0x2d   : > { %s822_s12 = sshll.u32 %s975_s10, 4  ;;  %s823_s12 = int_to_ptr.vmem [resolvable:$false] %s822_s12 }
  0x2e   : > { %p820_p6 = pnand %p818_p12, %p778_p3  ;;  %s824_s14 = scalar_lea.vmem %s823_s12, 64 }
  0x2f   : > { %p825_p1 = scmp.lt.s32.totalorder %s246_s25, %s823_s12  ;;  %p826_p2 = scmp.lt.s32.totalorder %s824_s14, %s817_s0 }
  0x30   : > { %p821_p7 = pneg %p820_p6 }
  0x31   : > { %p827_p4 = por %p826_p2, %p825_p1 }
  0x33   : > { %p828_p10 = pnand %p827_p4, %p821_p7 }
  0x35   : > { %831 = shalt.err (!%p828_p10)
}
  0x36   : > { %707 = dma.hbm_to_vmem [thread:$0]  (!%p1085_p0), %s243_s26, 32, %s246_s25, %s231_s22  }
  0x37   : > { %254 = sbr.rel (%p1103_p5) target bundleno = 202 (0xca), region = 28  ;;  %s1121_s5 = sand.u32 (!%p1103_p5), 1, %s956_s16  }
  0x38   : > { %s1124_s8 = sshll.u32 (!%p1103_p5), %s1121_s5, 3  ;;  %s257_s9 = scalar_lea.sflag (!%p1103_p5), [#allocation3], %s1121_s5 }
  0x39   : > { %s260_s0 = scalar_lea.vmem (!%p1103_p5), [#allocation2], %s1124_s8 }
  0x3c   : > { %935 = dma.done.wait (%p1056_p8), %s257_s9, 128  }
  0x3d   : > { %937 = vsyncadd (%p1056_p8), %s257_s9, 4294967168  ;;  %s671_s22 = sshll.u32 %s1121_s5, 1  ;;  %s266_s13 = scalar_lea.sflag [#allocation6], %s1121_s5 }
  0x3e   : > { %s269_s7 = scalar_lea.vmem [#allocation5], %s671_s22 }
  0x3f   : > { %939 = dma.done.wait (%p1056_p8), %s266_s13, 32  }
  0x40   : > { %941 = vsyncadd (%p1056_p8), %s266_s13, 4294967264  ;;  %v320_v0 = vlaneseq  ;;  %vm327_vm0 = vcmask 1043456   ;;  %v322_v4 = vld [vmem:[%s260_s0] sm:$0xff]  ;;  %v323_v5 = vld [vmem:[%s269_s7] sm:$0x3]  ;;  %v976_v14 = vmov 0.0  }
  0x41   : > { %v325_v6 = vcombine.high %v322_v4, %v322_v4  ;;  %v328_v7 = vsel %vm327_vm0, %v322_v4, -inf  ;;  %s308_s27 = scalar_lea.vmem [#allocation10], %s1124_s8  ;;  %s423_s11 = sand.u32 1, %s1036_s21  }
  0x42   : > { %v1138_v1 = vshrl.u32 %v320_v0, 7  ;;  %v329_v10 = vrot.slane %v328_v7, 4  ;;  %s1161_s24 = sshll.u32 %s964_s18, 7  ;;  %s301_s26 = scalar_lea.vmem [#allocation8], %s1124_s8 }
  0x43   : > { %v335_v11 = vsel %vm327_vm0, %v325_v6, -inf  ;;  %s461_s6 = sshll.u32 %s301_s26, 4  ;;  %s477_s25 = sshll.u32 %s308_s27, 4  ;;  %s1174_s6 = int_to_ptr.vmem [resolvable:$true] %s461_s6  ;;  %s1176_s25 = int_to_ptr.vmem [resolvable:$true] %s477_s25 }
  0x44   : > { %v381_v2 = vsub.s32 0, %v1138_v1  ;;  %v385_v3 = vsub.s32 1, %v1138_v1  ;;  %v330_v12 = vmax.f32 %v328_v7, %v329_v10  ;;  %v336_v13 = vrot.slane %v335_v11, 4  ;;  %s1172_s14 = scalar_lea.hbm %s1284_s3, %s1161_s24  ;;  %s1182_s9 = scalar_lea.hbm %s1285_s4, %s1161_s24 }
  0x45   : > { %s1287_s0 = scalar_lea.vmem [#allocation7], %s1124_s8  ;;  %s1192_s13 = scalar_lea.sflag [#allocation9], %s423_s11 }
  0x46   : > { %v382_v8 = vrot.slane %v323_v5, %v381_v2  ;;  %v1143_v9 = vrot.slane %v323_v5, %v385_v3  ;;  %v331_v18 = vrot.slane %v330_v12, 2  ;;  %v337_v19 = vmax.f32 %v335_v11, %v336_v13  ;;  %s1190_s22 = sshll.u32 %s1287_s0, 4  ;;  %s832_s7 = scalar_lea.vmem %s1174_s6, 128  ;;  %s446_s22 = int_to_ptr.vmem [resolvable:$true] %s1190_s22 }
  0x47   : > { %p833_p8 = scmp.ne.s32.totalorder %s1174_s6, %s832_s7 }
  0x48   : > { %vm387_vm1 = vcmp.eq.s32.totalorder %v1138_v1, %v382_v8  ;;  %vm388_vm2 = vcmp.eq.s32.totalorder %v1138_v1, %v1143_v9  ;;  %v332_v20 = vmax.f32 %v330_v12, %v331_v18  ;;  %v338_v21 = vrot.slane %v337_v19, 2 }
  0x49   : > { %v397_v15 = vsel %vm387_vm1, 1.0, %v976_v14  ;;  %v398_v16 = vsel %vm388_vm2, 1.0, %v976_v14  ;;  %p834_p0 = pnand %p833_p8, %p1060_p9 }
  0x4a   : > { %v414_v17 = vcombine.low %v397_v15, %v398_v16  ;;  %v333_v22 = vrot.slane %v332_v20, 1  ;;  %v339_v23 = vmax.f32 %v337_v19, %v338_v21 }
  0x4b   : > { %p835_p3 = pneg %p834_p0 }
  0x4c   : > { %417 = vst [vmem:[%s308_s27] sm:$0xff] %v414_v17  ;;  %v334_v24 = vmax.f32 %v332_v20, %v333_v22  ;;  %v340_v25 = vrot.slane %v339_v23, 1  ;;  %s977_s27 = smov [#allocation8]  }
  0x4d   : > { %s836_s10 = sshll.u32 %s977_s27, 4  ;;  %s837_s10 = int_to_ptr.vmem [resolvable:$false] %s836_s10 }
  0x4e   : > { %v341_v26 = vmax.f32 %v339_v23, %v340_v25  ;;  %p839_p13 = scmp.lt.s32.totalorder %s1174_s6, %s837_s10 }
  0x50   : > { %v344_v27 = vcombine.low %v334_v24, %v341_v26 }
  0x52   : > { %v346_v28 = vsub.f32 %v322_v4, %v344_v27 }
  0x54   : > { %v347_v29 = vmul.f32 1.442695, %v346_v28 }
  0x56   : > { %770 = vpow2.f32 %v347_v29 }
  0x63   : > { %v771_v30 = vpop.eup %770 }
  0x64   : > { %v350_v31 = vcombine.high %v771_v30, %v771_v30  ;;  %v352_v32 = vsel %vm327_vm0, %v771_v30, 0.0 }
  0x65   : > { %v353_v33 = vrot.slane %v352_v32, 4 }
  0x66   : > { %v359_v34 = vsel %vm327_vm0, %v350_v31, 0.0 }
  0x67   : > { %v354_v35 = vadd.f32 %v353_v33, %v352_v32  ;;  %v360_v36 = vrot.slane %v359_v34, 4 }
  0x69   : > { %v355_v37 = vrot.slane %v354_v35, 2  ;;  %v361_v38 = vadd.f32 %v360_v36, %v359_v34 }
  0x6b   : > { %v356_v39 = vadd.f32 %v355_v37, %v354_v35  ;;  %v362_v40 = vrot.slane %v361_v38, 2 }
  0x6d   : > { %v357_v41 = vrot.slane %v356_v39, 1  ;;  %v363_v42 = vadd.f32 %v362_v40, %v361_v38 }
  0x6f   : > { %v358_v43 = vadd.f32 %v357_v41, %v356_v39  ;;  %v364_v44 = vrot.slane %v363_v42, 1 }
  0x71   : > { %v365_v45 = vadd.f32 %v364_v44, %v363_v42  ;;  %772 = vrcp.f32 %v358_v43 }
  0x73   : > { %774 = vrcp.f32 %v365_v45 }
  0x7e   : > { %v773_v46 = vpop.eup %772 }
  0x7f   : > { %v368_v47 = vmul.f32 %v773_v46, %v358_v43 }
  0x80   : > { %v775_v48 = vpop.eup %774 }
  0x81   : > { %v369_v49 = vmul.f32 %v775_v48, %v365_v45  ;;  %v370_v50 = vsub.f32 2.0, %v368_v47 }
  0x83   : > { %v371_v51 = vsub.f32 2.0, %v369_v49  ;;  %v372_v52 = vmul.f32 %v773_v46, %v370_v50 }
  0x85   : > { %v373_v53 = vmul.f32 %v775_v48, %v371_v51 }
  0x87   : > { %v376_v54 = vcombine.low %v372_v52, %v373_v53 }
  0x89   : > { %v378_v55 = vmul.f32 %v771_v30, %v376_v54 }
  0x8b   : > { %v390_v56 = vcombine.high %v378_v55, %v378_v55  ;;  %v392_v57 = vsel %vm387_vm1, %v378_v55, 0.0  ;;  %410 = vst [vmem:[%s301_s26] sm:$0xff] %v378_v55  ;;  %s838_s26 = scalar_lea.vmem %s837_s10, 256 }
  0x8c   : > { %p840_p5 = scmp.lt.s32.totalorder %s838_s26, %s832_s7 }
  0x8d   : > { %v393_v58 = vsel %vm388_vm2, %v390_v56, 0.0 }
  0x8e   : > { %v404_v59 = vcombine.low %v392_v57, %v393_v58  ;;  %p841_p12 = por %p840_p5, %p839_p13 }
  0x90   : > { %p842_p6 = pnand %p841_p12, %p835_p3 }
  0x92   : > { %845 = shalt.err (!%p842_p6)
}
  0x93   : > { %s846_s11 = scalar_lea.hbm %s1172_s14, 128  ;;  %s850_s21 = scalar_lea.hbm %s1284_s3, 256 }
  0x94   : > { %p847_p7 = scmp.ne.s32.totalorder %s1172_s14, %s846_s11  ;;  %p851_p4 = scmp.lt.s32.totalorder %s1172_s14, %s1284_s3 }
  0x95   : > { %p852_p10 = scmp.lt.s32.totalorder %s850_s21, %s846_s11 }
  0x96   : > { %p848_p1 = pnand %p847_p7, %p1060_p9 }
  0x97   : > { %p853_p8 = por %p852_p10, %p851_p4 }
  0x98   : > { %p849_p2 = pneg %p848_p1 }
  0x9a   : > { %p854_p0 = pnand %p853_p8, %p849_p2 }
  0x9c   : > { %857 = shalt.err (!%p854_p0)
}
  0x9d   : > { %696 = dma.vmem_to_hbm [thread:$0]  (%p1060_p9), %s1174_s6, 128, %s1172_s14, %s1192_s13  }
  0x9e   : > { %s858_s7 = scalar_lea.vmem %s1176_s25, 128  ;;  %s978_s0 = smov [#allocation10]  }
  0x9f   : > { %p859_p3 = scmp.ne.s32.totalorder %s1176_s25, %s858_s7  ;;  %s862_s10 = sshll.u32 %s978_s0, 4  ;;  %s863_s10 = int_to_ptr.vmem [resolvable:$false] %s862_s10 }
  0xa0   : > { %s864_s26 = scalar_lea.vmem %s863_s10, 256  ;;  %p865_p12 = scmp.lt.s32.totalorder %s1176_s25, %s863_s10 }
  0xa1   : > { %p860_p13 = pnand %p859_p3, %p1060_p9  ;;  %p866_p6 = scmp.lt.s32.totalorder %s864_s26, %s858_s7 }
  0xa3   : > { %p861_p5 = pneg %p860_p13  ;;  %p867_p7 = por %p866_p6, %p865_p12 }
  0xa5   : > { %p868_p1 = pnand %p867_p7, %p861_p5 }
  0xa7   : > { %871 = shalt.err (!%p868_p1)
}
  0xa8   : > { %s872_s11 = scalar_lea.hbm %s1182_s9, 128  ;;  %s876_s12 = scalar_lea.hbm %s1285_s4, 256 }
  0xa9   : > { %p873_p2 = scmp.ne.s32.totalorder %s1182_s9, %s872_s11  ;;  %p877_p8 = scmp.lt.s32.totalorder %s1182_s9, %s1285_s4 }
  0xaa   : > { %p878_p0 = scmp.lt.s32.totalorder %s876_s12, %s872_s11 }
  0xab   : > { %p874_p4 = pnand %p873_p2, %p1060_p9 }
  0xac   : > { %p879_p3 = por %p878_p0, %p877_p8 }
  0xad   : > { %p875_p10 = pneg %p874_p4 }
  0xaf   : > { %p880_p13 = pnand %p879_p3, %p875_p10 }
  0xb1   : > { %883 = shalt.err (!%p880_p13)
}
  0xb2   : > { %697 = dma.vmem_to_hbm [thread:$0]  (%p1060_p9), %s1176_s25, 128, %s1182_s9, %s1192_s13  }
  0xb3   : > { %s443_s0 = scalar_lea.hbm %s1283_s2, %s1161_s24  ;;  %s1296_s10 = scalar_lea.vmem [#allocation7], %s1124_s8 }
  0xb4   : > { %407 = vst [vmem:[%s1296_s10] sm:$0xff] %v404_v59  ;;  %s419_s26 = scalar_lea.sflag [#allocation4], %s1121_s5  ;;  %s884_s11 = scalar_lea.vmem %s446_s22, 128 }
  0xb5   : > { %p885_p5 = scmp.ne.s32.totalorder %s446_s22, %s884_s11  ;;  %s979_s6 = smov [#allocation7]  }
  0xb6   : > { %s888_s14 = sshll.u32 %s979_s6, 4  ;;  %s889_s14 = int_to_ptr.vmem [resolvable:$false] %s888_s14 }
  0xb7   : > { %p886_p12 = pnand %p885_p5, %p1060_p9  ;;  %s890_s12 = scalar_lea.vmem %s889_s14, 256 }
  0xb8   : > { %p891_p7 = scmp.lt.s32.totalorder %s446_s22, %s889_s14  ;;  %p892_p1 = scmp.lt.s32.totalorder %s890_s12, %s884_s11 }
  0xb9   : > { %p887_p6 = pneg %p886_p12 }
  0xba   : > { %p893_p2 = por %p892_p1, %p891_p7 }
  0xbc   : > { %p894_p4 = pnand %p893_p2, %p887_p6 }
  0xbe   : > { %897 = shalt.err (!%p894_p4)
}
  0xbf   : > { %s898_s25 = scalar_lea.hbm %s443_s0, 128  ;;  %s902_s24 = scalar_lea.hbm %s1283_s2, 256 }
  0xc0   : > { %p899_p10 = scmp.ne.s32.totalorder %s443_s0, %s898_s25  ;;  %p903_p3 = scmp.lt.s32.totalorder %s443_s0, %s1283_s2 }
  0xc1   : > { %p904_p13 = scmp.lt.s32.totalorder %s902_s24, %s898_s25 }
  0xc2   : > { %p900_p8 = pnand %p899_p10, %p1060_p9 }
  0xc3   : > { %p905_p5 = por %p904_p13, %p903_p3 }
  0xc4   : > { %p901_p0 = pneg %p900_p8 }
  0xc6   : > { %p906_p12 = pnand %p905_p5, %p901_p0 }
  0xc8   : > { %909 = shalt.err (!%p906_p12)
}
  0xc9   : > { %695 = dma.vmem_to_hbm [thread:$0]  (%p1060_p9), %s446_s22, 128, %s443_s0, %s419_s26  }
  0xca PF: > { %s489_s18 = sand.u32 1, %s952_s15   ;;  %p1297_p6 = scmp.ge.s32.totalorder %s972_s20, 2 }
  0xcb   : > { %s490_s21 = scalar_lea.sflag [#allocation4], %s489_s18 }
  0xcc   : > { %p709_p7 = pnand %p1297_p6, %p1069_p11 }
  0xce   : > { %p710_p1 = pneg %p709_p7 }
  0xd0   : > { %943 = dma.done.wait (%p710_p1), %s490_s21, 128  }
  0xd1   : > { %945 = vsyncadd (%p710_p1), %s490_s21, 4294967168  ;;  %s1298_s27 = sadd.s32 4294967294, %s972_s20  }
  0xd2   : > { %s498_s7 = sand.u32 1, %s1298_s27  }
  0xd3   : > { %s499_s10 = scalar_lea.sflag [#allocation9], %s498_s7 }
  0xd4   : > { %947 = dma.done.wait (%p710_p1), %s499_s10, 256  }
  0xd5   : > { %949 = vsyncadd (%p710_p1), %s499_s10, 4294967040  ;;  %s27_s20 = sadd.s32 1, %s972_s20   ;;  %s1299_s15 = smov %s956_s16 }
  0xd6   : > { %p24_p9 = scmp.ge.s32.totalorder %s27_s20, 4   ;;  %s1300_s16 = smov %s960_s17 }
  0xd7   : > { %s1301_s17 = smov %s1067_s29  ;;  %s1302_s18 = smov %s968_s19 }
  0xd8   : > { %s1303_s19 = smov %s1305_s23  ;;  %26 = sbr.rel (!%p24_p9) target bundleno = 12 (0xc), region = 122 }
  0xdd   :  { %513 = vsyncpa [#allocation3], 1 }
  0xde   :  { %515 = vsyncpa [#allocation3 + $0x1], 1 }
  0xdf   :  { %516 = vsyncpa [#allocation6], 1 }
  0xe0   :  { %518 = vsyncpa [#allocation6 + $0x1], 1 }
  0xe1   :  { %519 = vsyncpa [#allocation4], 1 }
  0xe2   :  { %521 = vsyncpa [#allocation4 + $0x1], 1 }
  0xe3   :  { %522 = vsyncpa [#allocation9], 1 }
  0xe4   :  { %524 = vsyncpa [#allocation9 + $0x1], 1 }

</bundles_post_ra>
